<compile_context>
chip_gen: v7x
topology: tpu7x:2x2x1
jax: 0.10.0
libtpu: 0.0.40
codegen_flags: <defaults>
</compile_context>

<pallas_src>
import functools

import jax
import jax.numpy as jnp
from jax.experimental import pallas as pl
from jax.experimental.pallas import tpu as pltpu

_LANES = 128
_SUBLANES_BF16 = 16                    # bf16 packs 16 sublanes per vreg
_VMEM_TILE_BUDGET = 48 * 1024 * 1024   # keep tiles v7x-safe (64 MiB physical)


def _round_up(x, m):
    return -(-x // m) * m


def cbr_gemm_kernel(p_ref, w_ref, shift_ref, o_ref, *, act):
    """One (m, n) tile per grid step.

    p_ref:     (TM, K)   im2col patches tile (bf16)
    w_ref:     (K, TN)   BN-scale-folded conv weights (bf16)
    shift_ref: (1, TN)   folded BN shift (f32)
    o_ref:     (TM, TN)  output tile
    """
    acc = jnp.dot(p_ref[...], w_ref[...], preferred_element_type=jnp.float32)
    y = acc + shift_ref[...]           # broadcast (1, TN) over rows, f32
    if act:
        y = jnp.maximum(y, 0.0)
    o_ref[...] = y.astype(o_ref.dtype)


def cbr_forward(x_nchw, weight_oihw, gamma, beta, running_mean, running_var,
                *, eps=1e-5, padding=1, stride=1, dilation=1, act=True,
                tm=512, tn=512, matmul_dtype=jnp.bfloat16, out_dtype=None,
                return_nhwc=False):
    """Forward pass of CBR. x_nchw: (N, Cin, H, W) like PyTorch."""
    N, Cin, H, W = x_nchw.shape
    Cout, _, KH, KW = weight_oihw.shape
    Ho = (H + 2 * padding - dilation * (KH - 1) - 1) // stride + 1
    Wo = (W + 2 * padding - dilation * (KW - 1) - 1) // stride + 1

    if out_dtype is None:
        out_dtype = x_nchw.dtype
    out_itemsize = jnp.dtype(out_dtype).itemsize
    mm_itemsize = jnp.dtype(matmul_dtype).itemsize

    # ---- wrapper-side layout prep (one-time XLA ops, outside the kernel) ----
    # Cast once up-front so the 9x im2col intermediate is built in bf16.
    x = jnp.transpose(x_nchw.astype(matmul_dtype), (0, 2, 3, 1))   # NHWC
    xp = jnp.pad(x, ((0, 0), (padding, padding), (padding, padding), (0, 0)))

    # im2col: (N, Ho, Wo, KH*KW*Cin); tap ordering = (kh, kw, ci), kh slowest.
    cols = []
    for kh in range(KH):
        for kw in range(KW):
            h0 = kh * dilation
            w0 = kw * dilation
            cols.append(xp[:, h0:h0 + (Ho - 1) * stride + 1:stride,
                              w0:w0 + (Wo - 1) * stride + 1:stride, :])
    K = KH * KW * Cin
    M = N * Ho * Wo
    patches = jnp.concatenate(cols, axis=-1).reshape(M, K)   # bf16 directly

    # Fold BN (eval mode) in f32: scale into weights, only shift stays.
    scale = gamma.astype(jnp.float32) / jnp.sqrt(
        running_var.astype(jnp.float32) + eps)
    shift = beta.astype(jnp.float32) - running_mean.astype(jnp.float32) * scale

    # OIHW -> (KH, KW, Cin, Cout) -> (K, Cout), same (kh, kw, ci) ordering.
    w = jnp.transpose(weight_oihw.astype(jnp.float32), (2, 3, 1, 0)).reshape(K, Cout)
    w = w * scale[None, :]

    # Lane-dense output: pad Cout up to a multiple of 128 (unmasked vst).
    cout_pad = _round_up(Cout, _LANES)
    w = jnp.pad(w, ((0, 0), (0, cout_pad - Cout)))
    shift_p = jnp.pad(shift, (0, cout_pad - Cout)).reshape(1, cout_pad)
    shift_p = shift_p.astype(jnp.float32)

    # Pad K to a multiple of 128 only when it is cheap (<= ~12.5% inflation):
    # keeps the MXU contraction aligned for big-Cin layers without blowing up
    # HBM bytes on the small-Cin stem.
    k_al = _round_up(K, _LANES)
    if k_al != K and k_al <= K + K // 8:
        patches = jnp.pad(patches, ((0, 0), (0, k_al - K)))
        w = jnp.pad(w, ((0, k_al - K), (0, 0)))
        k_pad = k_al
    else:
        k_pad = K

    w = w.astype(matmul_dtype)

    # ---- pick Cout tile (tn must divide cout_pad, multiple of 128) ----------
    tn_req = max(_LANES, (tn // _LANES) * _LANES)
    if cout_pad <= tn_req:
        tn = cout_pad
    else:
        tn = _LANES
        for cand in range(tn_req, 0, -_LANES):
            if cout_pad % cand == 0:
                tn = cand
                break

    # ---- pick M tile --------------------------------------------------------
    tm = max(_SUBLANES_BF16, _round_up(min(tm, M), _SUBLANES_BF16))

    def _vmem_need(tm_, tn_):
        # double-buffered patch tile + weight tile + shift + output tile
        return (2 * tm_ * k_pad * mm_itemsize
                + 2 * k_pad * tn_ * mm_itemsize
                + 2 * tn_ * 4
                + 2 * tm_ * tn_ * out_itemsize)

    # (a) stay inside the v7x-safe VMEM tile budget
    while _vmem_need(tm, tn) > _VMEM_TILE_BUDGET and tm > 128:
        tm = max(128, _round_up(tm // 2, _SUBLANES_BF16))
    if _vmem_need(tm, tn) > _VMEM_TILE_BUDGET:
        tn = _LANES   # 128 always divides cout_pad

    # (b) give the grid enough steps so both v7x TensorCores pipeline
    num_n = cout_pad // tn
    while pl.cdiv(M, tm) * num_n < 8 and tm > 64:
        tm = max(64, _round_up(tm // 2, _SUBLANES_BF16))

    m_pad = _round_up(M, tm)
    if m_pad != M:
        patches = jnp.pad(patches, ((0, m_pad - M), (0, 0)))

    num_m = m_pad // tm
    vmem_need = _vmem_need(tm, tn)
    vmem_limit = int(min(vmem_need + 16 * 1024 * 1024, 96 * 1024 * 1024))

    in_bytes = (m_pad * k_pad * mm_itemsize
                + k_pad * cout_pad * mm_itemsize
                + cout_pad * 4)
    out_bytes = m_pad * cout_pad * out_itemsize

    kernel = functools.partial(cbr_gemm_kernel, act=act)

    out = pl.pallas_call(
        kernel,
        out_shape=jax.ShapeDtypeStruct((m_pad, cout_pad), out_dtype),
        grid_spec=pltpu.PrefetchScalarGridSpec(
            num_scalar_prefetch=0,
            grid=(num_m, num_n),          # n innermost: patch tile fetched once per m
            in_specs=[
                pl.BlockSpec((tm, k_pad), lambda m, n: (m, 0)),
                pl.BlockSpec((k_pad, tn), lambda m, n: (0, n)),
                pl.BlockSpec((1, tn), lambda m, n: (0, n)),
            ],
            out_specs=pl.BlockSpec((tm, tn), lambda m, n: (m, n)),
        ),
        compiler_params=pltpu.CompilerParams(
            dimension_semantics=("parallel", "parallel"),
            vmem_limit_bytes=vmem_limit,
        ),
        cost_estimate=pl.CostEstimate(
            flops=2 * M * K * Cout,
            transcendentals=0,
            bytes_accessed=int(in_bytes + out_bytes),
        ),
    )(patches, w, shift_p)

    # Strip padding only if any was added; then back to the requested layout.
    if m_pad != M:
        out = out[:M]
    if cout_pad != Cout:
        out = out[:, :Cout]
    out = out.reshape(N, Ho, Wo, Cout)
    if return_nhwc:
        return out
    return jnp.transpose(out, (0, 3, 1, 2))


def _reference(x_nchw, weight_oihw, gamma, beta, running_mean, running_var,
               *, eps=1e-5, padding=1, stride=1, dilation=1, act=True):
    """Plain-JAX f32 reference (lax conv) for a correctness check."""
    y = jax.lax.conv_general_dilated(
        x_nchw.astype(jnp.float32), weight_oihw.astype(jnp.float32),
        window_strides=(stride, stride),
        padding=[(padding, padding), (padding, padding)],
        rhs_dilation=(dilation, dilation),
        dimension_numbers=("NCHW", "OIHW", "NCHW"),
    )
    scale = (gamma / jnp.sqrt(running_var + eps)).reshape(1, -1, 1, 1)
    shift = (beta - running_mean * gamma / jnp.sqrt(running_var + eps)
             ).reshape(1, -1, 1, 1)
    y = y * scale + shift
    if act:
        y = jnp.maximum(y, 0.0)
    return y


if __name__ == "__main__":
    key = jax.random.PRNGKey(0)
    k_x, k_w, k_g, k_b, k_m, k_v = jax.random.split(key, 6)

    N, Cin, H, W = 2, 4, 16, 16
    Cout, KH, KW = 8, 3, 3

    x = jax.random.normal(k_x, (N, Cin, H, W), dtype=jnp.float32)
    weight = jax.random.normal(k_w, (Cout, Cin, KH, KW), dtype=jnp.float32) * 0.1
    gamma = 1.0 + 0.1 * jax.random.normal(k_g, (Cout,), dtype=jnp.float32)
    beta = 0.1 * jax.random.normal(k_b, (Cout,), dtype=jnp.float32)
    running_mean = 0.05 * jax.random.normal(k_m, (Cout,), dtype=jnp.float32)
    running_var = 1.0 + 0.1 * jnp.abs(
        jax.random.normal(k_v, (Cout,), dtype=jnp.float32))

    out = cbr_forward(x, weight, gamma, beta, running_mean, running_var,
                      padding=1, act=True)
    out = jax.block_until_ready(out)

    ref = _reference(x, weight, gamma, beta, running_mean, running_var,
                     padding=1, act=True)
    assert out.shape == (N, Cout, H, W), out.shape
    # bf16 matmul inputs (f32 accumulation) vs f32 reference -> loose tolerance.
    assert jnp.allclose(out, ref, atol=5e-2, rtol=5e-2), \
        float(jnp.max(jnp.abs(out - ref)))

    print("KERNEL_OK")
</pallas_src>

<mosaic_0001>
module attributes {stable_mosaic.version = 11 : i64} {
  func.func @cbr_gemm_kernel(%arg0: i32, %arg1: i32, %arg2: memref<64x36xbf16, #tpu.memory_space<vmem>>, %arg3: memref<36x128xbf16, #tpu.memory_space<vmem>>, %arg4: memref<1x128xf32, #tpu.memory_space<vmem>>, %arg5: memref<64x128xf32, #tpu.memory_space<vmem>>) attributes {dimension_semantics = [#tpu.dimension_semantics<parallel>, #tpu.dimension_semantics<parallel>], iteration_bounds = array<i64: 8, 1>, scalar_prefetch = 0 : i64, scratch_operands = 0 : i64, tpu.core_type = #tpu.core_type<tc>, window_params = [{transform_indices = @transform_0, window_bounds = array<i64: 64, 36>}, {transform_indices = @transform_1, window_bounds = array<i64: 36, 128>}, {transform_indices = @transform_2, window_bounds = array<i64: 1, 128>}, {transform_indices = @transform_3, window_bounds = array<i64: 64, 128>}]} {
    %c0 = arith.constant 0 : index
    %c0_0 = arith.constant 0 : index
    %0 = vector.load %arg2[%c0, %c0_0] : memref<64x36xbf16, #tpu.memory_space<vmem>>, vector<64x36xbf16>
    %c0_1 = arith.constant 0 : index
    %c0_2 = arith.constant 0 : index
    %1 = vector.load %arg3[%c0_1, %c0_2] : memref<36x128xbf16, #tpu.memory_space<vmem>>, vector<36x128xbf16>
    %cst = arith.constant dense<0.000000e+00> : vector<64x128xf32>
    %2 = tpu.matmul %0, %1, %cst {dimension_numbers = #tpu.dot_dimension_numbers<[1], [0], [0], [1], [0, 0, 1, 1], [], []>} : vector<64x36xbf16>, vector<36x128xbf16>, vector<64x128xf32> -> vector<64x128xf32>
    %c0_3 = arith.constant 0 : index
    %c0_4 = arith.constant 0 : index
    %3 = vector.load %arg4[%c0_3, %c0_4] : memref<1x128xf32, #tpu.memory_space<vmem>>, vector<1x128xf32>
    %4 = vector.broadcast %3 : vector<1x128xf32> to vector<64x128xf32>
    %5 = arith.addf %2, %4 : vector<64x128xf32>
    %cst_5 = arith.constant 0.000000e+00 : f32
    %6 = vector.broadcast %cst_5 : f32 to vector<64x128xf32>
    %7 = arith.maximumf %5, %6 : vector<64x128xf32>
    %c0_6 = arith.constant 0 : index
    %c0_7 = arith.constant 0 : index
    %8 = vector.load %arg5[%c0_6, %c0_7] : memref<64x128xf32, #tpu.memory_space<vmem>>, vector<64x128xf32>
    tpu.vector_store %arg5[%c0_6, %c0_7], %7 {strides = array<i32>} : memref<64x128xf32, #tpu.memory_space<vmem>>, vector<64x128xf32>,
    return
  }
  func.func @transform_0(%arg0: i32, %arg1: i32) -> (i32, i32) {
    %c0_i32 = arith.constant 0 : i32
    %c0_i32_0 = arith.constant 0 : i32
    return %arg0, %c0_i32 : i32, i32
  }
  func.func @transform_1(%arg0: i32, %arg1: i32) -> (i32, i32) {
    %c0_i32 = arith.constant 0 : i32
    %c0_i32_0 = arith.constant 0 : i32
    return %c0_i32, %arg1 : i32, i32
  }
  func.func @transform_2(%arg0: i32, %arg1: i32) -> (i32, i32) {
    %c0_i32 = arith.constant 0 : i32
    %c0_i32_0 = arith.constant 0 : i32
    return %c0_i32, %arg1 : i32, i32
  }
  func.func @transform_3(%arg0: i32, %arg1: i32) -> (i32, i32) {
    %c0_i32 = arith.constant 0 : i32
    return %arg0, %arg1 : i32, i32
  }
}

</mosaic_0001>

<bundles_post_ra>
// kernel: tpu_custom_call.1
= control target key start
LH: loop header
LB: loop body
LE: loop exit
PB: predicated region body
PF: predicated region fallthrough
CT: control target
= control target key end

     0   :  { %8 = vsyncpa [#allocation3], 0  ;;  %s839_s0 = inlined_call_operand.vmem [shape: bf16[512,36], index: 0, kind: input, shape index: {}]   ;;  %s840_s1 = inlined_call_operand.vmem [shape: bf16[36,128], index: 1, kind: input, shape index: {}]   ;;  %s841_s2 = inlined_call_operand.vmem [shape: f32[1,128], index: 2, kind: input, shape index: {}]   ;;  %s842_s3 = inlined_call_operand.hbm [shape: f32[512,128], index: 3, kind: output, shape index: {}]  }
   0x1   :  { %10 = vsyncpa [#allocation3 + $0x1], 0  ;;  %s709_s12 = smov 0   ;;  %s711_s13 = smov 0  }
   0x2   :  { %s713_s14 = smov 0   ;;  %s715_s15 = smov 0  }
   0x3   :  { %s717_s16 = smov 0   ;;  %s719_s17 = smov 0  }
   0x4 LB: > { %s485_s18 = sadd.s32 4294967295, %s684_s17   ;;  %s486_s19 = sadd.s32 4294967294, %s684_s17   ;;  %s684_s17 = sphi %s719_s17, %s16_s17   ;;  %s680_s16 = sphi %s717_s16, %s849_s16   ;;  %s676_s15 = sphi %s715_s15, %s848_s15   ;;  %s672_s14 = sphi %s713_s14, %s847_s14   ;;  %s668_s13 = sphi %s711_s13, %s846_s13   ;;  %s664_s12 = sphi %s709_s12, %s845_s12  }
   0x5   : > { %s28_s20 = sadd.s32 1, %s680_s16  ;;  %s115_s21 = sadd.s32 1, %s672_s14 }
   0x6   : > { %p30_p0 = scmp.ge.s32.totalorder %s28_s20, 8  ;;  %p125_p1 = scmp.ne.s32.totalorder %s672_s14, %s668_s13 }
   0x7   : > { %p126_p2 = scmp.eq.s32.totalorder %s485_s18, 7  ;;  %p131_p3 = scmp.ne.s32.totalorder %s668_s13, %s664_s12 }
   0x8   : > { %s851_s20 = smov (%p30_p0, %s28_s20), 0  ;;  %p132_p5 = scmp.eq.s32.totalorder %s486_s19, 7 }
   0x9   : > { %p749_p4 = por %p126_p2, %p125_p1  ;;  %s110_s23 = ssub.s32 %s680_s16, %s851_s20 }
   0xa   : > { %p491_p6 = scmp.ge.s32.totalorder %s684_s17, 1  ;;  %p113_p7 = scmp.eq.s32.totalorder %s110_s23, 0 }
   0xb   : > { %p756_p8 = por %p132_p5, %p131_p3  ;;  %p172_p9 = scmp.lt.s32.totalorder %s684_s17, 9 }
   0xc   : > { %s762_s25 = scalar_select %p113_p7, %s672_s14, %s115_s21  }
   0xd   : > { %p173_p10 = pnand %p491_p6, %p172_p9 }
   0xe   : > { %v599_v0 = vld [vmem:[%s840_s1] sm:$0xff] (!%p173_p10)   ;;  %v600_v1 = vld [vmem:[%s840_s1 + $0x8] sm:$0xff] (!%p173_p10)   ;;  %s493_s30 = sshll.u32 (!%p173_p10), %s676_s15, 3  ;;  %v601_v2 = vld [vmem:[%s840_s1 + $0x10] ss:$0 sps:$4 sm:$0x33] (!%p173_p10)  }
   0xf   : > { %176 = sbr.rel (%p173_p10) target bundleno = 261 (0x105), region = 32  ;;  %520 = vmatprep.subr.bf16.mxu0 (!%p173_p10), %v599_v0  ;;  %534 = vmatprep.subr.bf16.mxu1 (!%p173_p10), %v599_v0  ;;  %p204_p11 = scmp.lt.s32.totalorder (!%p173_p10), %s493_s30, 63  ;;  %vm286_vm0 = vcmask (!%p173_p10), 1041408   ;;  %vm273_vm1 = vcmask (!%p173_p10), 293888   ;;  %v495_v8 = vld [vmem:[%s841_s2] ss:$0 sm:$0xff] (!%p173_p10) }
  0x10   : > { %521 = vmatpush3.bf16.msra.mxu0 (!%p173_p10), %v599_v0  ;;  %537 = vmatpush3.bf16.msra.mxu1 (!%p173_p10), %v599_v0  ;;  %v288_v3 = vsel (!%p173_p10), %vm286_vm0, %v601_v2, 0  ;;  %s200_s10 = sand.u32 (!%p173_p10), 1, %s668_s13   ;;  %s512_s21 = sshll.u32 (!%p173_p10), %s676_s15, 10 }
  0x11   : > { %522 = vmatprep.subr.bf16.mxu0 (!%p173_p10), %v600_v1  ;;  %535 = vmatprep.subr.bf16.mxu1 (!%p173_p10), %v600_v1  ;;  %s492_s11 = sshll.u32 (!%p173_p10), %s200_s10, 6  ;;  %s787_s28 = scalar_lea.hbm (!%p173_p10), %s842_s3, %s512_s21 }
  0x12   : > { %s202_s23 = scalar_lea.vmem (!%p173_p10), [#allocation2], %s492_s11  ;;  %s793_s29 = scalar_lea.sflag (!%p173_p10), [#allocation3], %s200_s10 }
  0x13   : > { %s386_s26 = sshll.u32 (!%p173_p10), %s202_s23, 4  ;;  %s686_s4 = smov (!%p173_p10), [#allocation2]   ;;  %s789_s26 = int_to_ptr.vmem [resolvable:$true] %s386_s26 }
  0x14   : > { %523 = vmatpush3.bf16.msra.mxu0 (!%p173_p10), %v600_v1  ;;  %538 = vmatpush3.bf16.msra.mxu1 (!%p173_p10), %v600_v1  ;;  %s610_s5 = sshll.u32 (!%p173_p10), %s686_s4, 4  ;;  %s611_s5 = int_to_ptr.vmem [resolvable:$false] %s610_s5 }
  0x15   : > { %540 = vmatprep.subr.msk.bf16.mxu0 (!%p173_p10), %vm286_vm0, %v601_v2  ;;  %541 = vmatprep.subr.msk.bf16.mxu1 (!%p173_p10), %vm286_vm0, %v601_v2  ;;  %p613_p1 = scmp.lt.s32.totalorder (!%p173_p10), %s789_s26, %s611_s5 }
  0x16   : > { %s853_s30 = smov (!%p204_p11, %s493_s30), 63 }
  0x17   : > { %s494_s6 = sshll.u32 %s853_s30, 2  ;;  %s606_s30 = scalar_lea.vmem %s789_s26, 1024 }
  0x18   : > { %s207_s9 = scalar_lea.vmem %s839_s0, %s494_s6  ;;  %525 = vmatpush3.bf16.msra.mxu0 %v288_v3  ;;  %539 = vmatpush3.bf16.msra.mxu1 %v288_v3  ;;  %p607_p12 = scmp.ne.s32.totalorder %s789_s26, %s606_s30 }
  0x19   : > { %v602_v4 = vld [vmem:[%s207_s9] sm:$0xff]   ;;  %v603_v5 = vld [vmem:[%s207_s9 + $0x10] sm:$0xff]   ;;  %v604_v6 = vld [vmem:[%s207_s9 + $0x8] sm:$0xff]   ;;  %s612_s6 = scalar_lea.vmem %s611_s5, 2048 }
  0x1a   : > { %526 = vmatprep.mubr.msk.bf16.mxu0 %vm273_vm1, %v602_v4  ;;  %v605_v7 = vld [vmem:[%s207_s9 + $0x18] sm:$0xff]   ;;  %530 = vmatprep.mubr.msk.bf16.mxu1 %vm273_vm1, %v603_v5  ;;  %p608_p13 = pnand %p607_p12, %p749_p4  ;;  %p614_p2 = scmp.lt.s32.totalorder %s612_s6, %s606_s30 }
  0x1b   : > { %527 = vmatmul.mubr.msk.bf16.vlgmr.msra.gmra.mrb[0].mxu0 %vm273_vm1, %v604_v6  ;;  %531 = vmatmul.mubr.msk.bf16.vlgmr.msra.gmra.mrb[0].mxu1 %vm273_vm1, %v605_v7 }
  0x1c   : > { %p609_p0 = pneg %p608_p13  ;;  %p615_p3 = por %p614_p2, %p613_p1 }
  0x1e   : > { %p616_p5 = pnand %p615_p3, %p609_p0 }
  0xee   : > { %v528_v9 = vpop.f32.mrb[0].mxu0  ;;  %v532_v10 = vpop.f32.mrb[0].mxu1 }
  0xef   : > { %v333_v11 = vadd.f32 %v528_v9, %v495_v8  ;;  %v349_v12 = vadd.f32 %v532_v10, %v495_v8  ;;  %v324_v13 = vpop.f32.mrb[1].mxu0  ;;  %v340_v14 = vpop.f32.mrb[1].mxu1 }
  0xf0   : > { %v325_v15 = vadd.f32 %v495_v8, %v324_v13  ;;  %v341_v16 = vadd.f32 %v495_v8, %v340_v14  ;;  %v529_v17 = vpop.f32.mrb[2].mxu0  ;;  %v533_v18 = vpop.f32.mrb[2].mxu1 }
  0xf1   : > { %v357_v19 = vmax.f32 %v333_v11, 0.0  ;;  %v361_v20 = vmax.f32 %v349_v12, 0.0  ;;  %v336_v21 = vadd.f32 %v529_v17, %v495_v8  ;;  %v352_v22 = vadd.f32 %v533_v18, %v495_v8  ;;  %v327_v23 = vpop.f32.mrb[3].mxu0  ;;  %v343_v24 = vpop.f32.mrb[3].mxu1 }
  0xf2   : > { %v355_v25 = vmax.f32 %v325_v15, 0.0  ;;  %v359_v26 = vmax.f32 %v341_v16, 0.0  ;;  %v328_v27 = vadd.f32 %v495_v8, %v327_v23  ;;  %v344_v28 = vadd.f32 %v495_v8, %v343_v24 }
  0xf3   : > { %365 = vst [vmem:[%s202_s23 + $0x10] sm:$0xff] %v357_v19  ;;  %369 = vst [vmem:[%s202_s23 + $0x30] sm:$0xff] %v361_v20  ;;  %v358_v29 = vmax.f32 %v336_v21, 0.0  ;;  %v362_v30 = vmax.f32 %v352_v22, 0.0 }
  0xf4   : > { %363 = vst [vmem:[%s202_s23] sm:$0xff] %v355_v25  ;;  %367 = vst [vmem:[%s202_s23 + $0x20] sm:$0xff] %v359_v26  ;;  %v356_v31 = vmax.f32 %v328_v27, 0.0  ;;  %v360_v32 = vmax.f32 %v344_v28, 0.0 }
  0xf5   : > { %366 = vst [vmem:[%s202_s23 + $0x18] sm:$0xff] %v358_v29  ;;  %370 = vst [vmem:[%s202_s23 + $0x38] sm:$0xff] %v362_v30 }
  0xf6   : > { %364 = vst [vmem:[%s202_s23 + $0x8] sm:$0xff] %v356_v31  ;;  %368 = vst [vmem:[%s202_s23 + $0x28] sm:$0xff] %v360_v32 }
  0xf7   : > { %619 = shalt.err (!%p616_p5)
}
  0xf8   : > { %s620_s7 = scalar_lea.hbm %s787_s28, 1024  ;;  %s624_s10 = scalar_lea.hbm %s842_s3, 8192 }
  0xf9   : > { %p621_p6 = scmp.ne.s32.totalorder %s787_s28, %s620_s7  ;;  %p625_p10 = scmp.lt.u32.totalorder %s787_s28, %s842_s3 }
  0xfa   : > { %p626_p11 = scmp.lt.u32.totalorder %s624_s10, %s620_s7  ;;  %p628_p13 = scmp.lt.u32.totalorder %s620_s7, %s787_s28 }
  0xfb   : > { %p622_p7 = pnand %p621_p6, %p749_p4 }
  0xfc   : > { %p627_p12 = por %p626_p11, %p625_p10 }
  0xfd   : > { %p623_p9 = pneg %p622_p7 }
  0xfe   : > { %p629_p0 = por %p628_p13, %p627_p12 }
 0x100   : > { %p630_p1 = pnand %p629_p0, %p623_p9 }
 0x102   : > { %633 = shalt.err (!%p630_p1)
}
 0x103   : > { %s687_s19 = smov 128   ;;  %s688_s21 = smov 8  }
 0x104   : > { %542 = dma.vmem_to_hbm [thread:$0]  (%p749_p4), %s789_s26, 1024, %s787_s28, %s793_s29, %s687_s19, %s687_s19, %s688_s21  }
 0x105 PF: > { %p548_p2 = scmp.ge.s32.totalorder %s684_s17, 2  ;;  %s401_s23 = sand.u32 1, %s664_s12  }
 0x106   : > { %s402_s27 = scalar_lea.sflag [#allocation3], %s401_s23 }
 0x107   : > { %p545_p3 = pnand %p548_p2, %p756_p8 }
 0x109   : > { %659 = dma.done.wait (!%p545_p3), %s402_s27, 1024  }
 0x10a   : > { %661 = vsyncadd (!%p545_p3), %s402_s27, 4294966272  ;;  %s16_s17 = sadd.s32 1, %s684_s17   ;;  %s845_s12 = smov %s668_s13 }
 0x10b   : > { %p13_p5 = scmp.ge.s32.totalorder %s16_s17, 10   ;;  %s846_s13 = smov %s672_s14 }
 0x10c   : > { %s847_s14 = smov %s762_s25  ;;  %s848_s15 = smov %s680_s16 }
 0x10d   : > { %s849_s16 = smov %s851_s20  ;;  %15 = sbr.rel (!%p13_p5) target bundleno = 4 (0x4), region = 73 }
 0x114   :  { %407 = vsyncpa [#allocation3], 1 }
 0x115   :  { %409 = vsyncpa [#allocation3 + $0x1], 1 }

</bundles_post_ra>
